<compile_context>
chip_gen: v7x
topology: tpu7x:2x2x1
jax: 0.10.0
libtpu: 0.0.40
codegen_flags: <defaults>
</compile_context>

<pallas_src>
import functools

import jax
import jax.numpy as jnp
from jax.experimental import pallas as pl
from jax.experimental.pallas import tpu as pltpu


# --------------------------------------------------------------------------- helpers
def _cdiv(a, b):
    return (a + b - 1) // b


def _round_up(v, m):
    return _cdiv(v, m) * m


def _vmem_tile_bytes(rows, cols, itemsize):
    # Conservative VMEM footprint of a (rows, cols) buffer after (8, 128) tiling.
    return _round_up(rows, 8) * _round_up(cols, 128) * itemsize


def _vmem_budget_bytes():
    """Usable VMEM budget: physical capacity with headroom (64 MiB fallback ~ v7x)."""
    phys = 64 * 1024 * 1024
    try:
        info = pltpu.get_tpu_info()
        cap = getattr(info, "vmem_capacity_bytes", None)
        if cap:
            phys = int(cap)
    except Exception:
        pass
    return int(phys) * 3 // 4


def _torch_squeeze_last(a):
    """PyTorch-style .squeeze(-1): drop the last dim only if it is 1."""
    return jnp.squeeze(a, axis=-1) if a.shape[-1] == 1 else a


# --------------------------------------------------------------------------- kernels
def _linear_kernel(x_ref, w_ref, b_ref, o_ref):
    # o = x @ w + b : one MXU dot with f32 accumulation, bias added in-kernel.
    acc = jnp.dot(x_ref[...], w_ref[...], preferred_element_type=jnp.float32)
    o_ref[...] = (acc + b_ref[...].astype(jnp.float32)).astype(o_ref.dtype)


def _linear_ktiled_kernel(x_ref, w_ref, b_ref, o_ref, acc_ref, *, d_in, tk, needs_mask):
    # Grid = (batch tiles, K tiles); K is the reduction ("arbitrary") axis.
    k = pl.program_id(1)

    @pl.when(k == 0)
    def _():
        acc_ref[...] = jnp.zeros_like(acc_ref)

    xv = x_ref[...]
    wv = w_ref[...]
    if needs_mask:
        # Last K tile extends past d_in; zero both operands' out-of-range slice so the
        # unspecified out-of-bounds data cannot contaminate the accumulation.
        valid = d_in - k * tk
        col = jax.lax.broadcasted_iota(jnp.int32, xv.shape, 1)
        row = jax.lax.broadcasted_iota(jnp.int32, wv.shape, 0)
        xv = jnp.where(col < valid, xv, 0)
        wv = jnp.where(row < valid, wv, 0)

    acc_ref[...] += jnp.dot(xv, wv, preferred_element_type=jnp.float32)

    @pl.when(k == pl.num_programs(1) - 1)
    def _():
        o_ref[...] = (acc_ref[...] + b_ref[...].astype(jnp.float32)).astype(o_ref.dtype)


# --------------------------------------------------------------------------- wrapper
def lin_classifier_forward(x, w, b, *, tm_max=4096, tk=512, small_batch_rows=256,
                           path=None, stream_dtype=None):
    """out = x @ w + b   (x: (B, d_in), w: (d_in, n_class), b: (n_class,))."""
    B, d_in = x.shape
    d_in_w, n_class = w.shape
    assert d_in == d_in_w and b.shape == (n_class,)
    out_dtype = x.dtype

    if stream_dtype is not None:
        # Optional: stream x/w/b in a narrower dtype (e.g. bf16); MXU still accumulates
        # in f32 and the output keeps the caller's dtype.
        x = x.astype(stream_dtype)
        w = w.astype(stream_dtype)
        b = b.astype(stream_dtype)

    b2 = b.reshape(1, n_class)
    itemsize = jnp.dtype(x.dtype).itemsize
    out_itemsize = jnp.dtype(out_dtype).itemsize
    budget = _vmem_budget_bytes()
    out_shape = jax.ShapeDtypeStruct((B, n_class), out_dtype)

    # VMEM footprint estimates (pipelined inputs/outputs are double-buffered).
    w_vmem = _vmem_tile_bytes(d_in, n_class, itemsize)
    b_vmem = _vmem_tile_bytes(1, n_class, itemsize)

    def _single_fits():
        need = (_vmem_tile_bytes(B, d_in, itemsize) + w_vmem + b_vmem
                + _vmem_tile_bytes(B, n_class, out_itemsize))
        return need <= budget

    def _batch_row_bytes():
        # Per batch row, double-buffered x tile + double-buffered out tile.
        return 2 * (_round_up(d_in, 128) * itemsize
                    + _round_up(n_class, 128) * out_itemsize)

    if path is None:
        if B <= small_batch_rows and _single_fits():
            path = "single"
        elif 2 * (w_vmem + b_vmem) + 8 * _batch_row_bytes() <= budget:
            path = "batch"
        else:
            path = "batch_k"

    # ---------------------------------------------------------------- single block
    if path == "single":
        # Gridless: whole operands as single VMEM blocks, no pipeline machinery.
        return pl.pallas_call(
            _linear_kernel,
            out_shape=out_shape,
            in_specs=[
                pl.BlockSpec(memory_space=pltpu.MemorySpace.VMEM),
                pl.BlockSpec(memory_space=pltpu.MemorySpace.VMEM),
                pl.BlockSpec(memory_space=pltpu.MemorySpace.VMEM),
            ],
            out_specs=pl.BlockSpec(memory_space=pltpu.MemorySpace.VMEM),
            compiler_params=pltpu.CompilerParams(vmem_limit_bytes=budget),
        )(x, w, b2)

    # ---------------------------------------------------------------- batch tiled
    if path == "batch":
        # >= 2 grid steps keeps both v7x TensorCores busy; adaptive tm avoids padding
        # B up to a fixed tile multiple. Weight/bias stay resident (constant index_map).
        n_tiles = max(2 if B > 8 else 1, _cdiv(B, tm_max))
        tm = _round_up(_cdiv(B, n_tiles), 8)
        avail = budget - 2 * (w_vmem + b_vmem)
        tm_fit = max(8, (avail // _batch_row_bytes()) // 8 * 8)
        tm = max(8, min(tm, tm_fit))
        n_tiles = _cdiv(B, tm)   # last block may be partial; OOB rows are masked on store

        return pl.pallas_call(
            _linear_kernel,
            out_shape=out_shape,
            grid_spec=pltpu.PrefetchScalarGridSpec(
                num_scalar_prefetch=0,
                grid=(n_tiles,),
                in_specs=[
                    pl.BlockSpec((tm, d_in), lambda i: (i, 0)),
                    pl.BlockSpec((d_in, n_class), lambda i: (0, 0)),
                    pl.BlockSpec((1, n_class), lambda i: (0, 0)),
                ],
                out_specs=pl.BlockSpec((tm, n_class), lambda i: (i, 0)),
            ),
            compiler_params=pltpu.CompilerParams(
                dimension_semantics=("parallel",),
                vmem_limit_bytes=budget,
            ),
        )(x, w, b2)

    # ---------------------------------------------------------------- batch + K tiled
    # Very large d_in: stream the weight in (tk, n_class) slabs along a reduction axis
    # instead of holding the whole weight / x slab resident in VMEM.
    tk_eff = min(_round_up(d_in, 128), _round_up(tk, 128))
    nk = _cdiv(d_in, tk_eff)
    needs_mask = (d_in % tk_eff) != 0

    n_tiles = max(2 if B > 8 else 1, _cdiv(B, tm_max))
    tm = _round_up(_cdiv(B, n_tiles), 8)
    fixed = 2 * (tk_eff * _round_up(n_class, 128) * itemsize) + 2 * b_vmem
    per_row = (2 * tk_eff * itemsize
               + 2 * _round_up(n_class, 128) * out_itemsize
               + _round_up(n_class, 128) * 4)                      # f32 accumulator
    tm_fit = max(8, ((budget - fixed) // per_row) // 8 * 8)
    tm = max(8, min(tm, tm_fit))
    n_tiles = _cdiv(B, tm)

    kernel = functools.partial(_linear_ktiled_kernel,
                               d_in=d_in, tk=tk_eff, needs_mask=needs_mask)
    return pl.pallas_call(
        kernel,
        out_shape=out_shape,
        grid_spec=pltpu.PrefetchScalarGridSpec(
            num_scalar_prefetch=0,
            grid=(n_tiles, nk),
            in_specs=[
                pl.BlockSpec((tm, tk_eff), lambda i, k: (i, k)),
                pl.BlockSpec((tk_eff, n_class), lambda i, k: (k, 0)),
                pl.BlockSpec((1, n_class), lambda i, k: (0, 0)),
            ],
            out_specs=pl.BlockSpec((tm, n_class), lambda i, k: (i, 0)),
            scratch_shapes=[pltpu.VMEM((tm, n_class), jnp.float32)],
        ),
        compiler_params=pltpu.CompilerParams(
            dimension_semantics=("parallel", "arbitrary"),
            vmem_limit_bytes=budget,
        ),
    )(x, w, b2)


def meta_model_forward(x, w, b, encoder_fn=None):
    """MetaModel.forward: encoder(x).squeeze(-1) -> classifier -> squeeze(-1)."""
    # TODO(synk): the real encoder / shapelet_trans / optional LayerNorm are external
    # modules injected into MetaModel and are not specified here; identity encoder used.
    x_enc = x if encoder_fn is None else encoder_fn(x)
    x_enc = _torch_squeeze_last(x_enc)            # encoder(x).squeeze(-1)
    x_out = lin_classifier_forward(x_enc, w, b)   # classifier(x_enc)
    return _torch_squeeze_last(x_out)             # x_out.squeeze(-1)


# --------------------------------------------------------------------------- demo
if __name__ == "__main__":
    batch, d_in, n_class = 8, 32, 10

    key = jax.random.PRNGKey(0)
    kx, kw, kb = jax.random.split(key, 3)

    # nn.Linear-style init: U(-1/sqrt(d_in), 1/sqrt(d_in)).
    bound = 1.0 / (d_in ** 0.5)
    # Encoder output carries a trailing singleton dim (as implied by .squeeze(-1)).
    x = jax.random.normal(kx, (batch, d_in, 1), dtype=jnp.float32)
    w = jax.random.uniform(kw, (d_in, n_class), dtype=jnp.float32,
                           minval=-bound, maxval=bound)
    b = jax.random.uniform(kb, (n_class,), dtype=jnp.float32,
                           minval=-bound, maxval=bound)

    # Small-batch (gridless, single-VMEM-block) path.
    out = meta_model_forward(x, w, b)
    out = jax.block_until_ready(out)
    x2d = jnp.squeeze(x, axis=-1)
    ref = x2d @ w + b
    assert out.shape == (batch, n_class)
    assert jnp.allclose(out, ref, atol=1e-5, rtol=1e-5)

    # Batch-tiled path (multi-step "parallel" grid, weight resident, partial last tile).
    xb = jax.random.normal(jax.random.fold_in(kx, 1), (70, d_in), dtype=jnp.float32)
    ob = lin_classifier_forward(xb, w, b, tm_max=16, path="batch")
    ob = jax.block_until_ready(ob)
    assert jnp.allclose(ob, xb @ w + b, atol=1e-5, rtol=1e-5)

    # K-tiled path (reduction grid axis, accumulator scratch, masked ragged last K tile).
    d_big = 200
    kw2, kb2, kx3 = jax.random.split(jax.random.fold_in(key, 2), 3)
    wk = jax.random.uniform(kw2, (d_big, n_class), dtype=jnp.float32,
                            minval=-bound, maxval=bound)
    bk = jax.random.uniform(kb2, (n_class,), dtype=jnp.float32,
                            minval=-bound, maxval=bound)
    xk = jax.random.normal(kx3, (24, d_big), dtype=jnp.float32)
    ok = lin_classifier_forward(xk, wk, bk, tk=128, path="batch_k")
    ok = jax.block_until_ready(ok)
    assert jnp.allclose(ok, xk @ wk + bk, atol=1e-4, rtol=1e-4)

    print("KERNEL_OK")
</pallas_src>

<mosaic_0001>
module attributes {stable_mosaic.version = 11 : i64} {
  func.func @_linear_kernel(%arg0: memref<8x32xf32, #tpu.memory_space<vmem>>, %arg1: memref<32x10xf32, #tpu.memory_space<vmem>>, %arg2: memref<1x10xf32, #tpu.memory_space<vmem>>, %arg3: memref<8x10xf32, #tpu.memory_space<vmem>>) attributes {dimension_semantics = [], scalar_prefetch = 0 : i64, scratch_operands = 0 : i64, tpu.core_type = #tpu.core_type<tc>} {
    %c0 = arith.constant 0 : index
    %c0_0 = arith.constant 0 : index
    %0 = vector.load %arg0[%c0, %c0_0] : memref<8x32xf32, #tpu.memory_space<vmem>>, vector<8x32xf32>
    %c0_1 = arith.constant 0 : index
    %c0_2 = arith.constant 0 : index
    %1 = vector.load %arg1[%c0_1, %c0_2] : memref<32x10xf32, #tpu.memory_space<vmem>>, vector<32x10xf32>
    %cst = arith.constant dense<0.000000e+00> : vector<8x10xf32>
    %2 = tpu.matmul %0, %1, %cst {dimension_numbers = #tpu.dot_dimension_numbers<[1], [0], [0], [1], [0, 0, 1, 1], [], []>} : vector<8x32xf32>, vector<32x10xf32>, vector<8x10xf32> -> vector<8x10xf32>
    %c0_3 = arith.constant 0 : index
    %c0_4 = arith.constant 0 : index
    %3 = vector.load %arg2[%c0_3, %c0_4] : memref<1x10xf32, #tpu.memory_space<vmem>>, vector<1x10xf32>
    %4 = vector.broadcast %3 : vector<1x10xf32> to vector<8x10xf32>
    %5 = arith.addf %2, %4 : vector<8x10xf32>
    %c0_5 = arith.constant 0 : index
    %c0_6 = arith.constant 0 : index
    %6 = vector.load %arg3[%c0_5, %c0_6] : memref<8x10xf32, #tpu.memory_space<vmem>>, vector<8x10xf32>
    tpu.vector_store %arg3[%c0_5, %c0_6], %5 {strides = array<i32>} : memref<8x10xf32, #tpu.memory_space<vmem>>, vector<8x10xf32>,
    return
  }
}

</mosaic_0001>

<bundles_post_ra>
// kernel: tpu_custom_call.1
= control target key start
LH: loop header
LB: loop body
LE: loop exit
PB: predicated region body
PF: predicated region fallthrough
CT: control target
= control target key end

     0   :  { %v169_v3 = vmov 0.0|0.0   ;;  %vm170_vm0 = vmmov 0   ;;  %v171_v6 = vmov 0.0   ;;  %s223_s0 = inlined_call_operand.vmem [shape: f32[8,32], index: 0, kind: input, shape index: {}]   ;;  %s224_s1 = inlined_call_operand.vmem [shape: f32[32,10], index: 1, kind: input, shape index: {}]   ;;  %s225_s2 = inlined_call_operand.vmem [shape: f32[1,10], index: 2, kind: input, shape index: {}]   ;;  %s226_s3 = inlined_call_operand.hbm [shape: f32[8,10], index: 3, kind: output, shape index: {}]  }
   0x1   :  { %v16_v0 = vld [vmem:[%s224_s1] sm:$0xff]  ;;  %v17_v1 = vld [vmem:[%s224_s1 + $0x8] sm:$0xff]  ;;  %v18_v2 = vld [vmem:[%s224_s1 + $0x10] sm:$0xff]  ;;  %135 = vmatprep.subr.bf16.mxu0 %v169_v3  ;;  %132 = vmatprep.mubr.msk.f32.mxu0 %vm170_vm0, %v171_v6 }
   0x2   :  { %v136_v4 = vpack.c.bf16 %v17_v1, %v16_v0  ;;  %v19_v5 = vld [vmem:[%s224_s1 + $0x18] sm:$0xff] }
   0x3   :  { %8 = vsyncpa [#allocation3], 0  ;;  %v139_v7 = vpack.c.bf16 %v19_v5, %v18_v2  ;;  %v15_v8 = vld [vmem:[%s223_s0] sm:$0xff]  ;;  %vm27_vm1 = vcmask 261120   ;;  %s172_s24 = smov [#allocation2]   ;;  %vm101_vm2 = vcmask 80896  }
   0x4   :  { %137 = vmatpush3.bf16.msra.mxu0 %v136_v4  ;;  %v117_v9 = vld [vmem:[%s225_s2] ss:$0 sm:$0xff]  ;;  %s109_s1 = sshll.u32 %s172_s24, 4  ;;  %s110_s1 = int_to_ptr.vmem [resolvable:$true] %s109_s1 }
   0x5   :  { %138 = vmatprep.subr.bf16.mxu0 %v169_v3  ;;  %s145_s25 = scalar_lea.vmem %s110_s1, 128  ;;  %p150_p1 = scmp.lt.s32.totalorder %s110_s1, %s110_s1 }
   0x6   :  { %p146_p0 = scmp.ne.s32.totalorder %s110_s1, %s145_s25  ;;  %p151_p2 = scmp.lt.s32.totalorder %s145_s25, %s145_s25 }
   0x8   :  { %140 = vmatpush3.bf16.msra.mxu0 %v139_v7  ;;  %p152_p3 = por %p151_p2, %p150_p1 }
   0xa   :  { %p153_p4 = pnand %p152_p3, %p146_p0 }
   0xb   :  { %133 = vmatmul.mubr.msk.f32.vlgmr.msra.gmra.mrb[0].mxu0 %vm27_vm1, %v15_v8 }
  0xde   :  { %v97_v10 = vpop.f32.mrb[0].mxu0 }
  0xdf   :  { %v98_v11 = vadd.f32 %v117_v9, %v97_v10  ;;  %v134_v12 = vpop.f32.mrb[1].mxu0 }
  0xe1   :  { %102 = vst.msk [vmem:[#allocation2] sm:$0xff] %vm101_vm2, %v98_v11 }
  0xe2   :  { %156 = shalt.err (!%p153_p4)
}
  0xe3   :  { %s157_s27 = scalar_lea.hbm %s226_s3, 128 }
  0xe4   :  { %p158_p5 = scmp.ne.s32.totalorder %s226_s3, %s157_s27  ;;  %p161_p6 = scmp.lt.u32.totalorder %s157_s27, %s226_s3 }
  0xe6   :  { %p163_p7 = pnand %p161_p6, %p158_p5 }
  0xe8   :  { %166 = shalt.err (!%p163_p7)
}
  0xe9   :  { %112 = dma.vmem_to_hbm [thread:$0]  %s110_s1, 128, %s226_s3, [#allocation3]  }
  0xea   :  { %167 = dma.done.wait [#allocation3], 128  }
  0xeb   :  { %168 = vsyncadd [#allocation3], 4294967168 }
  0xec   :  { %116 = vsyncpa [#allocation3], 1 }

</bundles_post_ra>
